<compile_context>
chip_gen: v6e
topology: v6e:2x2x1
jax: 0.10.0
libtpu: 0.0.40
codegen_flags: <defaults>
</compile_context>

<pallas_src>
import numpy as np
import jax
import jax.numpy as jnp
from jax import lax
from jax.experimental import pallas as pl
from jax.experimental.pallas import tpu as pltpu


# ----------------------------- Pallas kernel -------------------------------

def _spectral_mix_kernel(x_ref, wp_ref, wc_ref, o_ref):
    """One grid step = (quadrant q, batch-tile bt, output pipe o).

    x_ref : [2, P, TB, C_in, M]   re/im spectral coeffs (this quadrant, batch tile)
    wp_ref: [2, P, M]             re/im pipe-mix weights for (q, o)
    wc_ref: [2, C_out, C_in]      re/im channel-mix weights for (q, o)
    o_ref : [2, TB, C_out, M]     re/im mixed spectrum for (q, o, batch tile)

    The mode axis M stays on the lane axis throughout.
    """
    n_pipe = x_ref.shape[1]
    tb = x_ref.shape[2]

    # ---- step 1: pipe mixing — unrolled complex FMA over input pipe z.
    #      Pure VPU work; no [B,C,P,M] broadcast product, no sublane reduce.
    tr = None
    ti = None
    for z in range(n_pipe):
        xr = x_ref[0, z]                       # [TB, C_in, M]
        xi = x_ref[1, z]
        wr = wp_ref[0:1, z:z + 1, :]           # [1, 1, M]  (broadcast over TB, C_in)
        wi = wp_ref[1:2, z:z + 1, :]
        pr = xr * wr - xi * wi
        pi = xr * wi + xi * wr
        tr = pr if tr is None else tr + pr
        ti = pi if ti is None else ti + pi

    # ---- step 2: channel mixing — [C_out, C_in] x [C_in, M] matmuls so M
    #      stays on lanes and the stores are full-width (lane-dense).
    wcr = wc_ref[0]                            # [C_out, C_in]
    wci = wc_ref[1]
    dn = (((1,), (0,)), ((), ()))              # contract C_in

    def cdot(w, t):
        return lax.dot_general(w, t, dn,
                               precision=lax.Precision.HIGHEST,
                               preferred_element_type=jnp.float32)

    for b in range(tb):
        trb = tr[b]                            # [C_in, M]
        tib = ti[b]
        o_ref[0, b, :, :] = cdot(wcr, trb) - cdot(wci, tib)   # real part
        o_ref[1, b, :, :] = cdot(wcr, tib) + cdot(wci, trb)   # imag part


def _spectral_mix(xlo, xhi, wp_lo, wp_hi, wc_lo, wc_hi, *, b_tile=None):
    """xlo/xhi: complex [P, B, C_in, M]; wp_*: complex [P_out, P_in, M];
    wc_*: complex [P, C_out, C_in].  Returns complex [P, B, C_out, M] x2."""
    P, B, C_in, M = xlo.shape
    C_out = wc_lo.shape[1]
    f32 = jnp.float32

    if b_tile is None:
        # Bound per-step VMEM for large batches (v7x: 64 MiB) while keeping
        # the full batch in one block for small problems.
        b_tile = B if B <= 8 else next(t for t in (8, 4, 2, 1) if B % t == 0)
    assert B % b_tile == 0
    n_bt = B // b_tile

    def pack(lo, hi):
        # -> [2 (lo/hi quadrant), 2 (re/im), ...] float32
        return jnp.stack(
            [jnp.stack([jnp.real(lo), jnp.imag(lo)], axis=0),
             jnp.stack([jnp.real(hi), jnp.imag(hi)], axis=0)],
            axis=0).astype(f32)

    x_in = pack(xlo, xhi)      # [2, 2, P, B, C_in, M]
    wp_in = pack(wp_lo, wp_hi)  # [2, 2, P_out, P_in, M]
    wc_in = pack(wc_lo, wc_hi)  # [2, 2, P, C_out, C_in]

    x_spec = pl.BlockSpec((None, 2, P, b_tile, C_in, M),
                          lambda q, bt, o: (q, 0, 0, bt, 0, 0))
    wp_spec = pl.BlockSpec((None, 2, None, P, M),
                           lambda q, bt, o: (q, 0, o, 0, 0))
    wc_spec = pl.BlockSpec((None, 2, None, C_out, C_in),
                           lambda q, bt, o: (q, 0, o, 0, 0))
    out_spec = pl.BlockSpec((None, 2, None, b_tile, C_out, M),
                            lambda q, bt, o: (q, 0, o, bt, 0, 0))

    grid_spec = pltpu.PrefetchScalarGridSpec(
        num_scalar_prefetch=0,
        grid=(2, n_bt, P),                 # (quadrant, batch tile, output pipe)
        in_specs=[x_spec, wp_spec, wc_spec],
        out_specs=out_spec,
    )

    y = pl.pallas_call(
        _spectral_mix_kernel,
        out_shape=jax.ShapeDtypeStruct((2, 2, P, B, C_out, M), f32),
        grid_spec=grid_spec,
        compiler_params=pltpu.CompilerParams(
            dimension_semantics=("parallel", "parallel", "parallel"),
            vmem_limit_bytes=32 * 1024 * 1024,
        ),
    )(x_in, wp_in, wc_in)

    ylo = lax.complex(y[0, 0], y[0, 1])    # [P, B, C_out, M]
    yhi = lax.complex(y[1, 0], y[1, 1])
    return ylo, yhi


# ------------------------- forward (method == 39) ---------------------------

def graph_spectral_conv2d_forward(x_list, params, modes1, modes2, *, b_tile=None):
    """Equivalent of Graph_SpectralConv2d.forward(x, method=39, ...)."""
    w10, w11, w15, w16 = params
    P = len(x_list)
    B, C_in, H, W = x_list[0].shape
    m1, m2, M = modes1, modes2, modes1 * modes2
    Wf = W // 2 + 1
    C_out = w15.shape[1]
    # method 39 channel mixing requires in_channels == out_channels.
    assert w15.shape[0] == C_in and w15.shape[2] == P

    # TODO(synk): rfftn/irfftn have no Pallas equivalent; kept as one batched XLA FFT each.
    x_stack = jnp.stack(x_list, axis=0)                      # [P, B, C, H, W]
    xf = jnp.fft.rfftn(x_stack, axes=(3, 4))                 # [P, B, C, H, Wf]
    xlo = xf[:, :, :, :m1, :m2].reshape(P, B, C_in, M)       # low-frequency quadrant
    xhi = xf[:, :, :, H - m1:, :m2].reshape(P, B, C_in, M)   # high-frequency quadrant

    # Weight re-layouts for the kernel (tiny tensors, glue only).
    wp_lo = jnp.transpose(w10.reshape(P, P, M), (1, 0, 2))   # [o_pipe, z, M]
    wp_hi = jnp.transpose(w11.reshape(P, P, M), (1, 0, 2))
    wc_lo = jnp.transpose(w15, (2, 1, 0))                    # [z, C_out, C_in]
    wc_hi = jnp.transpose(w16, (2, 1, 0))

    ylo, yhi = _spectral_mix(xlo, xhi, wp_lo, wp_hi, wc_lo, wc_hi, b_tile=b_tile)
    # ylo/yhi: complex [P, B, C_out, M] — free reshape into the irfft layout.
    f_lo = ylo.reshape(P, B, C_out, m1, m2)
    f_hi = yhi.reshape(P, B, C_out, m1, m2)

    out_ft = jnp.zeros((P, B, C_out, H, Wf), dtype=jnp.complex64)
    out_ft = out_ft.at[:, :, :, :m1, :m2].set(f_lo)
    out_ft = out_ft.at[:, :, :, H - m1:, :m2].set(f_hi)
    outs = jnp.fft.irfftn(out_ft, s=(H, W), axes=(3, 4))     # [P, B, C_out, H, W]
    return [outs[i] for i in range(P)]


# ------------------------- pure-JAX reference -------------------------------

def reference_forward(x_list, params, modes1, modes2):
    w10, w11, w15, w16 = params
    B, C, H, W = x_list[0].shape
    P = len(x_list)
    m1, m2 = modes1, modes2
    Wf = W // 2 + 1
    hp = jax.lax.Precision.HIGHEST

    ffts = [jnp.fft.rfftn(t, axes=(2, 3)) for t in x_list]
    fno_in = jnp.stack([f[:, :, :m1, :m2] for f in ffts], axis=2)
    fno_in_h = jnp.stack([f[:, :, H - m1:, :m2] for f in ffts], axis=2)

    a = jnp.einsum('bizxy,zoxy->bioxy', fno_in, w10, precision=hp)
    ah = jnp.einsum('bizxy,zoxy->bioxy', fno_in_h, w11, precision=hp)
    f_out = jnp.einsum('bizxy,ioz->bozxy', a, w15, precision=hp)
    f_out_h = jnp.einsum('bizxy,ioz->bozxy', ah, w16, precision=hp)

    outputs = []
    for i in range(P):
        out_ft = jnp.zeros((B, C, H, Wf), dtype=jnp.complex64)
        out_ft = out_ft.at[:, :, :m1, :m2].set(f_out[:, :, i])
        out_ft = out_ft.at[:, :, H - m1:, :m2].set(f_out_h[:, :, i])
        outputs.append(jnp.fft.irfftn(out_ft, s=(H, W), axes=(2, 3)))
    return outputs


# --------------------------------- main -------------------------------------

if __name__ == "__main__":
    key = jax.random.PRNGKey(0)
    B, C_in, C_out, H, W = 2, 4, 4, 16, 16   # method 39 requires C_in == C_out
    P = 3                                    # num_pipe (= modes3)
    m1, m2 = 4, 4
    scale = 1.0 / (C_in * C_out)

    keys = jax.random.split(key, 8 + P)

    def cplx_uniform(k1, k2, shape):
        re = scale * jax.random.uniform(k1, shape, dtype=jnp.float32)
        im = scale * jax.random.uniform(k2, shape, dtype=jnp.float32)
        return jax.lax.complex(re, im)

    # Deterministic "parameters" (same shapes as the nn.Parameters for method 39).
    w10 = cplx_uniform(keys[0], keys[1], (P, P, m1, m2))       # weights10
    w11 = cplx_uniform(keys[2], keys[3], (P, P, m1, m2))       # weights11
    w15 = cplx_uniform(keys[4], keys[5], (C_out, C_out, P))    # weights15
    w16 = cplx_uniform(keys[6], keys[7], (C_out, C_out, P))    # weights16
    params = (w10, w11, w15, w16)

    # Input: list of num_pipe NCHW tensors.
    x_list = [
        jax.random.normal(keys[8 + i], (B, C_in, H, W), dtype=jnp.float32)
        for i in range(P)
    ]

    outs = graph_spectral_conv2d_forward(x_list, params, m1, m2)
    outs = jax.block_until_ready(outs)

    refs = reference_forward(x_list, params, m1, m2)
    refs = jax.block_until_ready(refs)

    ok = all(
        np.allclose(np.asarray(o), np.asarray(r), rtol=1e-4, atol=1e-5)
        for o, r in zip(outs, refs)
    )
    if not ok:
        raise AssertionError("Pallas kernel output mismatch vs reference")
    print("KERNEL_OK")
</pallas_src>

<mosaic_0001>
module attributes {stable_mosaic.version = 11 : i64} {
  func.func @_spectral_mix_kernel(%arg0: i32, %arg1: i32, %arg2: i32, %arg3: memref<1x2x3x2x4x16xf32, #tpu.memory_space<vmem>>, %arg4: memref<1x2x1x3x16xf32, #tpu.memory_space<vmem>>, %arg5: memref<1x2x1x4x4xf32, #tpu.memory_space<vmem>>, %arg6: memref<1x2x1x2x4x16xf32, #tpu.memory_space<vmem>>) attributes {dimension_semantics = [#tpu.dimension_semantics<parallel>, #tpu.dimension_semantics<parallel>, #tpu.dimension_semantics<parallel>], iteration_bounds = array<i64: 2, 1, 3>, scalar_prefetch = 0 : i64, scratch_operands = 0 : i64, tpu.core_type = #tpu.core_type<tc>, window_params = [{transform_indices = @transform_0, window_bounds = array<i64: 1, 2, 3, 2, 4, 16>}, {transform_indices = @transform_1, window_bounds = array<i64: 1, 2, 1, 3, 16>}, {transform_indices = @transform_2, window_bounds = array<i64: 1, 2, 1, 4, 4>}, {transform_indices = @transform_3, window_bounds = array<i64: 1, 2, 1, 2, 4, 16>}]} {
    %c0 = arith.constant 0 : index
    %c0_0 = arith.constant 0 : index
    %c0_1 = arith.constant 0 : index
    %c0_2 = arith.constant 0 : index
    %c0_3 = arith.constant 0 : index
    %c0_4 = arith.constant 0 : index
    %0 = vector.load %arg3[%c0, %c0_0, %c0_1, %c0_2, %c0_3, %c0_4] : memref<1x2x3x2x4x16xf32, #tpu.memory_space<vmem>>, vector<1x1x1x2x4x16xf32>
    %1 = vector.shape_cast %0 : vector<1x1x1x2x4x16xf32> to vector<2x4x16xf32>
    %c0_5 = arith.constant 0 : index
    %c1 = arith.constant 1 : index
    %c0_6 = arith.constant 0 : index
    %c0_7 = arith.constant 0 : index
    %c0_8 = arith.constant 0 : index
    %c0_9 = arith.constant 0 : index
    %2 = vector.load %arg3[%c0_5, %c1, %c0_6, %c0_7, %c0_8, %c0_9] : memref<1x2x3x2x4x16xf32, #tpu.memory_space<vmem>>, vector<1x1x1x2x4x16xf32>
    %3 = vector.shape_cast %2 : vector<1x1x1x2x4x16xf32> to vector<2x4x16xf32>
    %c0_10 = arith.constant 0 : index
    %c0_11 = arith.constant 0 : index
    %c0_12 = arith.constant 0 : index
    %c0_13 = arith.constant 0 : index
    %c0_14 = arith.constant 0 : index
    %4 = vector.load %arg4[%c0_10, %c0_11, %c0_12, %c0_13, %c0_14] : memref<1x2x1x3x16xf32, #tpu.memory_space<vmem>>, vector<1x1x1x1x16xf32>
    %5 = vector.shape_cast %4 : vector<1x1x1x1x16xf32> to vector<1x1x16xf32>
    %c0_15 = arith.constant 0 : index
    %c1_16 = arith.constant 1 : index
    %c0_17 = arith.constant 0 : index
    %c0_18 = arith.constant 0 : index
    %c0_19 = arith.constant 0 : index
    %6 = vector.load %arg4[%c0_15, %c1_16, %c0_17, %c0_18, %c0_19] : memref<1x2x1x3x16xf32, #tpu.memory_space<vmem>>, vector<1x1x1x1x16xf32>
    %7 = vector.shape_cast %6 : vector<1x1x1x1x16xf32> to vector<1x1x16xf32>
    %8 = vector.broadcast %5 : vector<1x1x16xf32> to vector<2x4x16xf32>
    %9 = arith.mulf %1, %8 : vector<2x4x16xf32>
    %10 = vector.broadcast %7 : vector<1x1x16xf32> to vector<2x4x16xf32>
    %11 = arith.mulf %3, %10 : vector<2x4x16xf32>
    %12 = arith.subf %9, %11 : vector<2x4x16xf32>
    %13 = vector.broadcast %7 : vector<1x1x16xf32> to vector<2x4x16xf32>
    %14 = arith.mulf %1, %13 : vector<2x4x16xf32>
    %15 = vector.broadcast %5 : vector<1x1x16xf32> to vector<2x4x16xf32>
    %16 = arith.mulf %3, %15 : vector<2x4x16xf32>
    %17 = arith.addf %14, %16 : vector<2x4x16xf32>
    %c0_20 = arith.constant 0 : index
    %c0_21 = arith.constant 0 : index
    %c1_22 = arith.constant 1 : index
    %c0_23 = arith.constant 0 : index
    %c0_24 = arith.constant 0 : index
    %c0_25 = arith.constant 0 : index
    %18 = vector.load %arg3[%c0_20, %c0_21, %c1_22, %c0_23, %c0_24, %c0_25] : memref<1x2x3x2x4x16xf32, #tpu.memory_space<vmem>>, vector<1x1x1x2x4x16xf32>
    %19 = vector.shape_cast %18 : vector<1x1x1x2x4x16xf32> to vector<2x4x16xf32>
    %c0_26 = arith.constant 0 : index
    %c1_27 = arith.constant 1 : index
    %c1_28 = arith.constant 1 : index
    %c0_29 = arith.constant 0 : index
    %c0_30 = arith.constant 0 : index
    %c0_31 = arith.constant 0 : index
    %20 = vector.load %arg3[%c0_26, %c1_27, %c1_28, %c0_29, %c0_30, %c0_31] : memref<1x2x3x2x4x16xf32, #tpu.memory_space<vmem>>, vector<1x1x1x2x4x16xf32>
    %21 = vector.shape_cast %20 : vector<1x1x1x2x4x16xf32> to vector<2x4x16xf32>
    %c0_32 = arith.constant 0 : index
    %c0_33 = arith.constant 0 : index
    %c0_34 = arith.constant 0 : index
    %c1_35 = arith.constant 1 : index
    %c0_36 = arith.constant 0 : index
    %22 = vector.load %arg4[%c0_32, %c0_33, %c0_34, %c1_35, %c0_36] : memref<1x2x1x3x16xf32, #tpu.memory_space<vmem>>, vector<1x1x1x1x16xf32>
    %23 = vector.shape_cast %22 : vector<1x1x1x1x16xf32> to vector<1x1x16xf32>
    %c0_37 = arith.constant 0 : index
    %c1_38 = arith.constant 1 : index
    %c0_39 = arith.constant 0 : index
    %c1_40 = arith.constant 1 : index
    %c0_41 = arith.constant 0 : index
    %24 = vector.load %arg4[%c0_37, %c1_38, %c0_39, %c1_40, %c0_41] : memref<1x2x1x3x16xf32, #tpu.memory_space<vmem>>, vector<1x1x1x1x16xf32>
    %25 = vector.shape_cast %24 : vector<1x1x1x1x16xf32> to vector<1x1x16xf32>
    %26 = vector.broadcast %23 : vector<1x1x16xf32> to vector<2x4x16xf32>
    %27 = arith.mulf %19, %26 : vector<2x4x16xf32>
    %28 = vector.broadcast %25 : vector<1x1x16xf32> to vector<2x4x16xf32>
    %29 = arith.mulf %21, %28 : vector<2x4x16xf32>
    %30 = arith.subf %27, %29 : vector<2x4x16xf32>
    %31 = vector.broadcast %25 : vector<1x1x16xf32> to vector<2x4x16xf32>
    %32 = arith.mulf %19, %31 : vector<2x4x16xf32>
    %33 = vector.broadcast %23 : vector<1x1x16xf32> to vector<2x4x16xf32>
    %34 = arith.mulf %21, %33 : vector<2x4x16xf32>
    %35 = arith.addf %32, %34 : vector<2x4x16xf32>
    %36 = arith.addf %12, %30 : vector<2x4x16xf32>
    %37 = arith.addf %17, %35 : vector<2x4x16xf32>
    %c0_42 = arith.constant 0 : index
    %c0_43 = arith.constant 0 : index
    %c2 = arith.constant 2 : index
    %c0_44 = arith.constant 0 : index
    %c0_45 = arith.constant 0 : index
    %c0_46 = arith.constant 0 : index
    %38 = vector.load %arg3[%c0_42, %c0_43, %c2, %c0_44, %c0_45, %c0_46] : memref<1x2x3x2x4x16xf32, #tpu.memory_space<vmem>>, vector<1x1x1x2x4x16xf32>
    %39 = vector.shape_cast %38 : vector<1x1x1x2x4x16xf32> to vector<2x4x16xf32>
    %c0_47 = arith.constant 0 : index
    %c1_48 = arith.constant 1 : index
    %c2_49 = arith.constant 2 : index
    %c0_50 = arith.constant 0 : index
    %c0_51 = arith.constant 0 : index
    %c0_52 = arith.constant 0 : index
    %40 = vector.load %arg3[%c0_47, %c1_48, %c2_49, %c0_50, %c0_51, %c0_52] : memref<1x2x3x2x4x16xf32, #tpu.memory_space<vmem>>, vector<1x1x1x2x4x16xf32>
    %41 = vector.shape_cast %40 : vector<1x1x1x2x4x16xf32> to vector<2x4x16xf32>
    %c0_53 = arith.constant 0 : index
    %c0_54 = arith.constant 0 : index
    %c0_55 = arith.constant 0 : index
    %c2_56 = arith.constant 2 : index
    %c0_57 = arith.constant 0 : index
    %42 = vector.load %arg4[%c0_53, %c0_54, %c0_55, %c2_56, %c0_57] : memref<1x2x1x3x16xf32, #tpu.memory_space<vmem>>, vector<1x1x1x1x16xf32>
    %43 = vector.shape_cast %42 : vector<1x1x1x1x16xf32> to vector<1x1x16xf32>
    %c0_58 = arith.constant 0 : index
    %c1_59 = arith.constant 1 : index
    %c0_60 = arith.constant 0 : index
    %c2_61 = arith.constant 2 : index
    %c0_62 = arith.constant 0 : index
    %44 = vector.load %arg4[%c0_58, %c1_59, %c0_60, %c2_61, %c0_62] : memref<1x2x1x3x16xf32, #tpu.memory_space<vmem>>, vector<1x1x1x1x16xf32>
    %45 = vector.shape_cast %44 : vector<1x1x1x1x16xf32> to vector<1x1x16xf32>
    %46 = vector.broadcast %43 : vector<1x1x16xf32> to vector<2x4x16xf32>
    %47 = arith.mulf %39, %46 : vector<2x4x16xf32>
    %48 = vector.broadcast %45 : vector<1x1x16xf32> to vector<2x4x16xf32>
    %49 = arith.mulf %41, %48 : vector<2x4x16xf32>
    %50 = arith.subf %47, %49 : vector<2x4x16xf32>
    %51 = vector.broadcast %45 : vector<1x1x16xf32> to vector<2x4x16xf32>
    %52 = arith.mulf %39, %51 : vector<2x4x16xf32>
    %53 = vector.broadcast %43 : vector<1x1x16xf32> to vector<2x4x16xf32>
    %54 = arith.mulf %41, %53 : vector<2x4x16xf32>
    %55 = arith.addf %52, %54 : vector<2x4x16xf32>
    %56 = arith.addf %36, %50 : vector<2x4x16xf32>
    %57 = arith.addf %37, %55 : vector<2x4x16xf32>
    %c0_63 = arith.constant 0 : index
    %c0_64 = arith.constant 0 : index
    %c0_65 = arith.constant 0 : index
    %c0_66 = arith.constant 0 : index
    %c0_67 = arith.constant 0 : index
    %58 = vector.load %arg5[%c0_63, %c0_64, %c0_65, %c0_66, %c0_67] : memref<1x2x1x4x4xf32, #tpu.memory_space<vmem>>, vector<1x1x1x4x4xf32>
    %59 = vector.shape_cast %58 : vector<1x1x1x4x4xf32> to vector<4x4xf32>
    %c0_68 = arith.constant 0 : index
    %c1_69 = arith.constant 1 : index
    %c0_70 = arith.constant 0 : index
    %c0_71 = arith.constant 0 : index
    %c0_72 = arith.constant 0 : index
    %60 = vector.load %arg5[%c0_68, %c1_69, %c0_70, %c0_71, %c0_72] : memref<1x2x1x4x4xf32, #tpu.memory_space<vmem>>, vector<1x1x1x4x4xf32>
    %61 = vector.shape_cast %60 : vector<1x1x1x4x4xf32> to vector<4x4xf32>
    %62 = vector.extract_strided_slice %56 {offsets = [0, 0, 0], sizes = [1, 4, 16], strides = [1, 1, 1]} : vector<2x4x16xf32> to vector<1x4x16xf32>
    %63 = vector.shape_cast %62 : vector<1x4x16xf32> to vector<4x16xf32>
    %64 = vector.extract_strided_slice %57 {offsets = [0, 0, 0], sizes = [1, 4, 16], strides = [1, 1, 1]} : vector<2x4x16xf32> to vector<1x4x16xf32>
    %65 = vector.shape_cast %64 : vector<1x4x16xf32> to vector<4x16xf32>
    %cst = arith.constant dense<0.000000e+00> : vector<4x16xf32>
    %66 = tpu.matmul %59, %63, %cst {dimension_numbers = #tpu.dot_dimension_numbers<[1], [0], [0], [1], [0, 0, 1, 1], [], []>, precision = #tpu.contract_precision<fp32>} : vector<4x4xf32>, vector<4x16xf32>, vector<4x16xf32> -> vector<4x16xf32>
    %cst_73 = arith.constant dense<0.000000e+00> : vector<4x16xf32>
    %67 = tpu.matmul %61, %65, %cst_73 {dimension_numbers = #tpu.dot_dimension_numbers<[1], [0], [0], [1], [0, 0, 1, 1], [], []>, precision = #tpu.contract_precision<fp32>} : vector<4x4xf32>, vector<4x16xf32>, vector<4x16xf32> -> vector<4x16xf32>
    %68 = arith.subf %66, %67 : vector<4x16xf32>
    %c0_74 = arith.constant 0 : index
    %c0_75 = arith.constant 0 : index
    %c0_76 = arith.constant 0 : index
    %c0_77 = arith.constant 0 : index
    %c0_78 = arith.constant 0 : index
    %c0_79 = arith.constant 0 : index
    %69 = vector.load %arg6[%c0_74, %c0_75, %c0_76, %c0_77, %c0_78, %c0_79] : memref<1x2x1x2x4x16xf32, #tpu.memory_space<vmem>>, vector<1x1x1x1x4x16xf32>
    %70 = vector.shape_cast %69 : vector<1x1x1x1x4x16xf32> to vector<4x16xf32>
    %71 = vector.shape_cast %68 : vector<4x16xf32> to vector<1x1x1x1x4x16xf32>
    tpu.vector_store %arg6[%c0_74, %c0_75, %c0_76, %c0_77, %c0_78, %c0_79], %71 {strides = array<i32>} : memref<1x2x1x2x4x16xf32, #tpu.memory_space<vmem>>, vector<1x1x1x1x4x16xf32>,
    %cst_80 = arith.constant dense<0.000000e+00> : vector<4x16xf32>
    %72 = tpu.matmul %59, %65, %cst_80 {dimension_numbers = #tpu.dot_dimension_numbers<[1], [0], [0], [1], [0, 0, 1, 1], [], []>, precision = #tpu.contract_precision<fp32>} : vector<4x4xf32>, vector<4x16xf32>, vector<4x16xf32> -> vector<4x16xf32>
    %cst_81 = arith.constant dense<0.000000e+00> : vector<4x16xf32>
    %73 = tpu.matmul %61, %63, %cst_81 {dimension_numbers = #tpu.dot_dimension_numbers<[1], [0], [0], [1], [0, 0, 1, 1], [], []>, precision = #tpu.contract_precision<fp32>} : vector<4x4xf32>, vector<4x16xf32>, vector<4x16xf32> -> vector<4x16xf32>
    %74 = arith.addf %72, %73 : vector<4x16xf32>
    %c0_82 = arith.constant 0 : index
    %c1_83 = arith.constant 1 : index
    %c0_84 = arith.constant 0 : index
    %c0_85 = arith.constant 0 : index
    %c0_86 = arith.constant 0 : index
    %c0_87 = arith.constant 0 : index
    %75 = vector.load %arg6[%c0_82, %c1_83, %c0_84, %c0_85, %c0_86, %c0_87] : memref<1x2x1x2x4x16xf32, #tpu.memory_space<vmem>>, vector<1x1x1x1x4x16xf32>
    %76 = vector.shape_cast %75 : vector<1x1x1x1x4x16xf32> to vector<4x16xf32>
    %77 = vector.shape_cast %74 : vector<4x16xf32> to vector<1x1x1x1x4x16xf32>
    tpu.vector_store %arg6[%c0_82, %c1_83, %c0_84, %c0_85, %c0_86, %c0_87], %77 {strides = array<i32>} : memref<1x2x1x2x4x16xf32, #tpu.memory_space<vmem>>, vector<1x1x1x1x4x16xf32>,
    %78 = vector.extract_strided_slice %56 {offsets = [1, 0, 0], sizes = [1, 4, 16], strides = [1, 1, 1]} : vector<2x4x16xf32> to vector<1x4x16xf32>
    %79 = vector.shape_cast %78 : vector<1x4x16xf32> to vector<4x16xf32>
    %80 = vector.extract_strided_slice %57 {offsets = [1, 0, 0], sizes = [1, 4, 16], strides = [1, 1, 1]} : vector<2x4x16xf32> to vector<1x4x16xf32>
    %81 = vector.shape_cast %80 : vector<1x4x16xf32> to vector<4x16xf32>
    %cst_88 = arith.constant dense<0.000000e+00> : vector<4x16xf32>
    %82 = tpu.matmul %59, %79, %cst_88 {dimension_numbers = #tpu.dot_dimension_numbers<[1], [0], [0], [1], [0, 0, 1, 1], [], []>, precision = #tpu.contract_precision<fp32>} : vector<4x4xf32>, vector<4x16xf32>, vector<4x16xf32> -> vector<4x16xf32>
    %cst_89 = arith.constant dense<0.000000e+00> : vector<4x16xf32>
    %83 = tpu.matmul %61, %81, %cst_89 {dimension_numbers = #tpu.dot_dimension_numbers<[1], [0], [0], [1], [0, 0, 1, 1], [], []>, precision = #tpu.contract_precision<fp32>} : vector<4x4xf32>, vector<4x16xf32>, vector<4x16xf32> -> vector<4x16xf32>
    %84 = arith.subf %82, %83 : vector<4x16xf32>
    %c0_90 = arith.constant 0 : index
    %c0_91 = arith.constant 0 : index
    %c0_92 = arith.constant 0 : index
    %c1_93 = arith.constant 1 : index
    %c0_94 = arith.constant 0 : index
    %c0_95 = arith.constant 0 : index
    %85 = vector.load %arg6[%c0_90, %c0_91, %c0_92, %c1_93, %c0_94, %c0_95] : memref<1x2x1x2x4x16xf32, #tpu.memory_space<vmem>>, vector<1x1x1x1x4x16xf32>
    %86 = vector.shape_cast %85 : vector<1x1x1x1x4x16xf32> to vector<4x16xf32>
    %87 = vector.shape_cast %84 : vector<4x16xf32> to vector<1x1x1x1x4x16xf32>
    tpu.vector_store %arg6[%c0_90, %c0_91, %c0_92, %c1_93, %c0_94, %c0_95], %87 {strides = array<i32>} : memref<1x2x1x2x4x16xf32, #tpu.memory_space<vmem>>, vector<1x1x1x1x4x16xf32>,
    %cst_96 = arith.constant dense<0.000000e+00> : vector<4x16xf32>
    %88 = tpu.matmul %59, %81, %cst_96 {dimension_numbers = #tpu.dot_dimension_numbers<[1], [0], [0], [1], [0, 0, 1, 1], [], []>, precision = #tpu.contract_precision<fp32>} : vector<4x4xf32>, vector<4x16xf32>, vector<4x16xf32> -> vector<4x16xf32>
    %cst_97 = arith.constant dense<0.000000e+00> : vector<4x16xf32>
    %89 = tpu.matmul %61, %79, %cst_97 {dimension_numbers = #tpu.dot_dimension_numbers<[1], [0], [0], [1], [0, 0, 1, 1], [], []>, precision = #tpu.contract_precision<fp32>} : vector<4x4xf32>, vector<4x16xf32>, vector<4x16xf32> -> vector<4x16xf32>
    %90 = arith.addf %88, %89 : vector<4x16xf32>
    %c0_98 = arith.constant 0 : index
    %c1_99 = arith.constant 1 : index
    %c0_100 = arith.constant 0 : index
    %c1_101 = arith.constant 1 : index
    %c0_102 = arith.constant 0 : index
    %c0_103 = arith.constant 0 : index
    %91 = vector.load %arg6[%c0_98, %c1_99, %c0_100, %c1_101, %c0_102, %c0_103] : memref<1x2x1x2x4x16xf32, #tpu.memory_space<vmem>>, vector<1x1x1x1x4x16xf32>
    %92 = vector.shape_cast %91 : vector<1x1x1x1x4x16xf32> to vector<4x16xf32>
    %93 = vector.shape_cast %90 : vector<4x16xf32> to vector<1x1x1x1x4x16xf32>
    tpu.vector_store %arg6[%c0_98, %c1_99, %c0_100, %c1_101, %c0_102, %c0_103], %93 {strides = array<i32>} : memref<1x2x1x2x4x16xf32, #tpu.memory_space<vmem>>, vector<1x1x1x1x4x16xf32>,
    return
  }
  func.func @transform_0(%arg0: i32, %arg1: i32, %arg2: i32) -> (i32, i32, i32, i32, i32, i32) {
    %c0_i32 = arith.constant 0 : i32
    %c0_i32_0 = arith.constant 0 : i32
    %c0_i32_1 = arith.constant 0 : i32
    %c0_i32_2 = arith.constant 0 : i32
    %c0_i32_3 = arith.constant 0 : i32
    return %arg0, %c0_i32, %c0_i32_0, %arg1, %c0_i32_1, %c0_i32_2 : i32, i32, i32, i32, i32, i32
  }
  func.func @transform_1(%arg0: i32, %arg1: i32, %arg2: i32) -> (i32, i32, i32, i32, i32) {
    %c0_i32 = arith.constant 0 : i32
    %c0_i32_0 = arith.constant 0 : i32
    %c0_i32_1 = arith.constant 0 : i32
    %c0_i32_2 = arith.constant 0 : i32
    return %arg0, %c0_i32, %arg2, %c0_i32_0, %c0_i32_1 : i32, i32, i32, i32, i32
  }
  func.func @transform_2(%arg0: i32, %arg1: i32, %arg2: i32) -> (i32, i32, i32, i32, i32) {
    %c0_i32 = arith.constant 0 : i32
    %c0_i32_0 = arith.constant 0 : i32
    %c0_i32_1 = arith.constant 0 : i32
    %c0_i32_2 = arith.constant 0 : i32
    return %arg0, %c0_i32, %arg2, %c0_i32_0, %c0_i32_1 : i32, i32, i32, i32, i32
  }
  func.func @transform_3(%arg0: i32, %arg1: i32, %arg2: i32) -> (i32, i32, i32, i32, i32, i32) {
    %c0_i32 = arith.constant 0 : i32
    %c0_i32_0 = arith.constant 0 : i32
    %c0_i32_1 = arith.constant 0 : i32
    %c0_i32_2 = arith.constant 0 : i32
    return %arg0, %c0_i32, %arg2, %arg1, %c0_i32_0, %c0_i32_1 : i32, i32, i32, i32, i32, i32
  }
}

</mosaic_0001>

<bundles_post_ra>
// kernel: tpu_custom_call.1
= control target key start
LH: loop header
LB: loop body
LE: loop exit
PB: predicated region body
PF: predicated region fallthrough
CT: control target
= control target key end

     0   :  { %s5452_s0 = inlined_call_operand.hbm [shape: f32[2,2,3,2,4,16], index: 0, kind: input, shape index: {}]   ;;  %s5453_s1 = inlined_call_operand.vmem [shape: f32[2,2,3,3,16], index: 1, kind: input, shape index: {}]   ;;  %s5454_s2 = inlined_call_operand.vmem [shape: f32[2,2,3,4,4], index: 2, kind: input, shape index: {}]   ;;  %s5455_s3 = inlined_call_operand.hbm [shape: f32[2,2,3,2,4,16], index: 3, kind: output, shape index: {}]  }
   0x1   :  { %5459 = sst [smem:[#allocation17_spill]] %s5452_s0 }
   0x2   :  { %8 = vsyncpa [#allocation3], 0 }
   0x3   :  { %10 = vsyncpa [#allocation3 + $0x1], 0 }
   0x4   :  { %11 = vsyncpa [#allocation4], 0 }
   0x5   :  { %13 = vsyncpa [#allocation4 + $0x1], 0  ;;  %s4880_s12 = smov 0   ;;  %s4882_s13 = smov 0  }
   0x6   :  { %s4884_s14 = smov 0   ;;  %s4886_s15 = smov 0  }
   0x7   :  { %s4888_s16 = smov 0   ;;  %s4890_s17 = smov 0  }
   0x8   :  { %s4892_s18 = smov 0   ;;  %s4894_s19 = smov 0  }
   0x9   :  { %s4896_s20 = smov 0   ;;  %s4898_s21 = smov 0  }
   0xa   :  { %s4900_s22 = smov 0  }
   0xb LB: > { %s4229_s23 = sadd.s32 4294967295, %s4846_s22   ;;  %s4230_s24 = sadd.s32 4294967294, %s4846_s22   ;;  %s4846_s22 = sphi %s4900_s22, %s19_s22   ;;  %s4842_s21 = sphi %s4898_s21, %s5485_s21   ;;  %s4838_s20 = sphi %s4896_s20, %s5484_s20   ;;  %s4834_s19 = sphi %s4894_s19, %s5483_s19   ;;  %s4830_s18 = sphi %s4892_s18, %s5482_s18   ;;  %s4826_s17 = sphi %s4890_s17, %s5481_s17   ;;  %s4822_s16 = sphi %s4888_s16, %s5480_s16   ;;  %s4818_s15 = sphi %s4886_s15, %s5479_s15   ;;  %s4814_s14 = sphi %s4884_s14, %s5478_s14   ;;  %s4810_s13 = sphi %s4882_s13, %s5477_s13   ;;  %s4806_s12 = sphi %s4880_s12, %s5476_s12  }
   0xc   : > { %s31_s25 = sadd.s32 1, %s4838_s20  ;;  %s38_s26 = sadd.s32 1, %s4842_s21 }
   0xd   : > { %p32_p0 = scmp.ge.s32.totalorder %s31_s25, 3  ;;  %s47_s27 = sadd.s32 1, %s4826_s17 }
   0xe   : > { %p54_p1 = scmp.ne.s32.totalorder %s4826_s17, %s4822_s16  ;;  %p55_p2 = scmp.eq.s32.totalorder %s4846_s22, 0 }
   0xf   : > { %s5487_s25 = smov (%p32_p0, %s31_s25), 0  ;;  %s5489_s26 = smov (!%p32_p0, %s38_s26), %s4842_s21 }
  0x10   : > { %5460 = sst [smem:[#allocation12_spill]] %s5487_s25  ;;  %p4946_p3 = por %p55_p2, %p54_p1 }
  0x11   : > { %p60_p4 = scmp.ne.s32.totalorder %s4822_s16, %s4818_s15  ;;  %p40_p5 = scmp.ge.s32.totalorder %s5489_s26, 2 }
  0x12   : > { %p61_p6 = scmp.eq.s32.totalorder %s4229_s23, 0  ;;  %s71_s29 = ssub.s32 %s4838_s20, %s5487_s25 }
  0x13   : > { %s75_s30 = sadd.s32 1, %s4814_s14  ;;  %s5491_s26 = smov (%p40_p5, %s5489_s26), 0 }
  0x14   : > { %5462 = sst [smem:[#allocation13_spill]] %s5491_s26  ;;  %p4956_p7 = por %p61_p6, %p60_p4 }
  0x15   : > { %p82_p8 = scmp.ne.s32.totalorder %s4814_s14, %s4810_s13  ;;  %s42_s5 = ssub.s32 %s4842_s21, %s5491_s26 }
  0x16   : > { %p144_p9 = scmp.eq.s32.totalorder %s4229_s23, 5  ;;  %p45_p10 = scmp.eq.s32.totalorder %s42_s5, 0 }
  0x17   : > { %s72_s6 = sor.u32 %s71_s29, %s42_s5  ;;  %p4966_p12 = por %p82_p8, %p55_p2 }
  0x18   : > { %p73_p11 = scmp.eq.s32.totalorder %s72_s6, 0  ;;  %p4976_p13 = por %p144_p9, %p82_p8 }
  0x19   : > { %s4971_s8 = scalar_select %p45_p10, %s4826_s17, %s47_s27  }
  0x1a   : > { %s4974_s9 = scalar_select %p73_p11, %s4814_s14, %s75_s30  }
  0x1b   : > { %5465 = sst [smem:[#allocation14_spill]] %s4971_s8  ;;  %p149_p0 = scmp.ne.s32.totalorder %s4810_s13, %s4806_s12 }
  0x1c   : > { %5466 = sst [smem:[#allocation15_spill]] %s4974_s9  ;;  %p150_p1 = scmp.eq.s32.totalorder %s4230_s24, 5 }
  0x1d   : > { %p4232_p5 = scmp.ge.s32.totalorder %s4846_s22, 6 }
  0x1e   : > { %p4982_p4 = por %p150_p1, %p149_p0  ;;  %s170_s15 = sand.u32 (!%p4232_p5), 1, %s4826_s17  }
  0x1f   : > { %166 = sbr.rel (%p4232_p5) target bundleno = 66 (0x42), region = 16  ;;  %s5470_s0 = sld [smem:[#allocation17_spill]] (!%p4232_p5) }
  0x20   : > { %s5468_s11 = scalar_select %p4982_p4, 1, 0 }
  0x21   : > { %s4607_s23 = smul.u32 (!%p4232_p5), 768, %s4842_s21  ;;  %s171_s24 = scalar_lea.sflag (!%p4232_p5), [#allocation3], %s170_s15 }
  0x22   : > { %5469 = sst [smem:[#allocation16_spill]] %s5468_s11  ;;  %s4606_s27 = smul.u32 (!%p4232_p5), 48, %s170_s15 }
  0x23   : > { %s4848_s8 = smov (!%p4232_p5), [#allocation2]  }
  0x24   : > { %s174_s6 = scalar_lea.vmem [#allocation2], %s4606_s27  ;;  %s4742_s9 = sshll.u32 %s4848_s8, 4  ;;  %s4743_s9 = int_to_ptr.vmem [resolvable:$false] %s4742_s9 }
  0x25   : > { %s182_s5 = scalar_lea.hbm %s5470_s0, %s4607_s23  ;;  %s183_s26 = sshll.u32 %s174_s6, 4  ;;  %s184_s26 = int_to_ptr.vmem [resolvable:$true] %s183_s26 }
  0x26   : > { %s4738_s25 = scalar_lea.vmem %s184_s26, 768  ;;  %s4744_s11 = scalar_lea.vmem %s4743_s9, 1536 }
  0x27   : > { %p4739_p2 = scmp.ne.s32.totalorder %s184_s26, %s4738_s25  ;;  %p4745_p9 = scmp.lt.s32.totalorder %s184_s26, %s4743_s9 }
  0x28   : > { %p4746_p10 = scmp.lt.s32.totalorder %s4744_s11, %s4738_s25 }
  0x29   : > { %p4740_p6 = pnand %p4739_p2, %p4946_p3 }
  0x2a   : > { %p4747_p11 = por %p4746_p10, %p4745_p9 }
  0x2b   : > { %p4741_p8 = pneg %p4740_p6 }
  0x2d   : > { %p4748_p0 = pnand %p4747_p11, %p4741_p8 }
  0x2f   : > { %4751 = shalt.err (!%p4748_p0)
}
  0x30   : > { %s4849_s29 = smov 64   ;;  %s4850_s23 = smov 4  }
  0x31   : > { %4612 = dma.hbm_to_vmem [thread:$0]  (%p4946_p3), %s182_s5, 768, %s184_s26, %s171_s24, %s4849_s29, %s4849_s29, %s4850_s23  }
  0x32   : > { %192 = sbr.rel (!%p4966_p12) target bundleno = 58 (0x3a), region = 24  ;;  %s194_s15 = sand.u32 (%p4966_p12), 1, %s4814_s14  }
  0x33   : > { %s4608_s8 = smul.u32 (%p4966_p12), 6, %s4842_s21  ;;  %s4234_s27 = sshll.u32 (%p4966_p12), %s194_s15, 3 }
  0x34   : > { %s196_s0 = scalar_lea.vmem (%p4966_p12), [#allocation5], %s4234_s27 }
  0x35   : > { %s198_s30 = sadd.s32 (%p4966_p12), %s4838_s20, %s4608_s8 }
  0x36   : > { %s4235_s9 = sshll.u32 (%p4966_p12), %s198_s30, 2 }
  0x37   : > { %s200_s6 = scalar_lea.vmem %s5453_s1, %s4235_s9 }
  0x38   : > { %v217_v0 = vld [vmem:[%s200_s6] sm:$0xf]  ;;  %v219_v1 = vld [vmem:[%s200_s6 + $0xc] sm:$0xf] }
  0x39   : > { %218 = vst [vmem:[%s196_s0] sm:$0xf] %v217_v0  ;;  %220 = vst [vmem:[%s196_s0 + $0x4] sm:$0xf] %v219_v1 }
  0x3a PF: > { %248 = sbr.rel (!%p4966_p12) target bundleno = 66 (0x42), region = 65  ;;  %s250_s26 = sand.u32 (%p4966_p12), 1, %s4814_s14  }
  0x3b   : > { %s4609_s28 = smul.u32 (%p4966_p12), 6, %s4842_s21  ;;  %s4236_s5 = sshll.u32 (%p4966_p12), %s250_s26, 3 }
  0x3c   : > { %s252_s27 = scalar_lea.vmem (%p4966_p12), [#allocation6], %s4236_s5 }
  0x3d   : > { %s254_s24 = sadd.s32 (%p4966_p12), %s4838_s20, %s4609_s28 }
  0x3e   : > { %s4237_s29 = sshll.u32 (%p4966_p12), %s254_s24, 2 }
  0x3f   : > { %s256_s8 = scalar_lea.vmem %s5454_s2, %s4237_s29 }
  0x40   : > { %v273_v2 = vld [vmem:[%s256_s8] sm:$0xf]  ;;  %v275_v3 = vld [vmem:[%s256_s8 + $0xc] sm:$0xf] }
  0x41   : > { %274 = vst [vmem:[%s252_s27] sm:$0xf] %v273_v2  ;;  %276 = vst [vmem:[%s252_s27 + $0x4] sm:$0xf] %v275_v3 }
  0x42 PF: > { %p4238_p3 = scmp.ge.s32.totalorder %s4846_s22, 1  ;;  %p303_p12 = scmp.lt.s32.totalorder %s4846_s22, 7 }
  0x44   : > { %p304_p1 = pnand %p4238_p3, %p303_p12 }
  0x45   : > { %s309_s0 = sand.u32 (!%p304_p1), 1, %s4822_s16  }
  0x46   : > { %307 = sbr.rel (%p304_p1) target bundleno = 400 (0x190), region = 106  ;;  %s310_s30 = scalar_lea.sflag (!%p304_p1), [#allocation3], %s309_s0 }
  0x47   : > { %s4610_s7 = smul.u32 (!%p304_p1), 48, %s309_s0 }
  0x49   : > { %s5015_s9 = scalar_lea.vmem (!%p304_p1), [#allocation2], %s4610_s7 }
  0x4b   : > { %4797 = dma.done.wait (%p4956_p7), %s310_s30, 768  }
  0x4c   : > { %4799 = vsyncadd (%p4956_p7), %s310_s30, 4294966528  ;;  %s5022_s25 = sand.u32 1, %s4810_s13   ;;  %v4851_v4 = vmov 0.0   ;;  %vm4852_vm0 = vmmov 0   ;;  %vm455_vm1 = vcmask 31744   ;;  %vm459_vm2 = vcmask 1043456  }
  0x4d   : > { %4366 = vmatprep.subr.mxu0 %v4851_v4  ;;  %s4239_s11 = sshll.u32 %s5022_s25, 3  ;;  %4368 = vmatprep.mubr.msk.f32.mxu0 %vm4852_vm0, %v4851_v4  ;;  %v360_v5 = vld [vmem:[%s5015_s9] sm:$0xf]  ;;  %v4242_v6 = vld [vmem:[%s5015_s9 + $0x18] sm:$0xf]  ;;  %s4241_s26 = sshll.u32 %s5022_s25, 4 }
  0x4e   : > { %4371 = vmatprep.subr.mxu1 %v4851_v4  ;;  %4373 = vmatprep.mubr.msk.f32.mxu1 %vm4852_vm0, %v4851_v4  ;;  %s321_s4 = scalar_lea.vmem [#allocation5], %s4239_s11  ;;  %v4247_v10 = vld [vmem:[%s5015_s9 + $0x8] sm:$0xf]  ;;  %v4249_v11 = vld [vmem:[%s5015_s9 + $0x20] sm:$0xf]  ;;  %s328_s6 = scalar_lea.vmem [#allocation6], %s4239_s11 }
  0x4f   : > { %v5033_v7 = vld [vmem:[%s321_s4] ss:$0 sm:$0xff]  ;;  %v5035_v8 = vld [vmem:[%s321_s4 + $0x4] ss:$0 sm:$0xff]  ;;  %v5042_v14 = vld [vmem:[%s321_s4 + $0x1] ss:$0 sm:$0xff] }
  0x50   : > { %v372_v9 = vmul.f32 %v5033_v7, %v360_v5  ;;  %v384_v12 = vmul.f32 %v5033_v7, %v4242_v6  ;;  %v378_v13 = vmul.f32 %v5035_v8, %v4242_v6  ;;  %v5044_v15 = vld [vmem:[%s321_s4 + $0x5] ss:$0 sm:$0xff]  ;;  %v4254_v16 = vld [vmem:[%s5015_s9 + $0x10] sm:$0xf]  ;;  %v382_v17 = vmul.f32 %v5035_v8, %v360_v5  ;;  %v4256_v20 = vld [vmem:[%s5015_s9 + $0x28] sm:$0xf] }
  0x51   : > { %v400_v18 = vmul.f32 %v5042_v14, %v4247_v10  ;;  %v406_v19 = vmul.f32 %v5044_v15, %v4249_v11  ;;  %v5051_v21 = vld [vmem:[%s321_s4 + $0x2] ss:$0 sm:$0xff]  ;;  %v5053_v22 = vld [vmem:[%s321_s4 + $0x6] ss:$0 sm:$0xff]  ;;  %v410_v23 = vmul.f32 %v5044_v15, %v4247_v10  ;;  %v412_v24 = vmul.f32 %v5042_v14, %v4249_v11  ;;  %v452_v28 = vld [vmem:[%s328_s6] sm:$0xf] }
  0x52   : > { %v380_v25 = vsub.f32 %v372_v9, %v378_v13  ;;  %v432_v26 = vmul.f32 %v5051_v21, %v4254_v16  ;;  %v438_v27 = vmul.f32 %v5053_v22, %v4256_v20  ;;  %v386_v29 = vadd.f32 %v384_v12, %v382_v17  ;;  %v4261_v30 = vld [vmem:[%s328_s6 + $0x4] sm:$0xf]  ;;  %v361_v0 = vld [vmem:[%s5015_s9 + $0x4] sm:$0xf]  ;;  %v4243_v1 = vld [vmem:[%s5015_s9 + $0x1c] sm:$0xf] }
  0x53   : > { %v408_v31 = vsub.f32 %v400_v18, %v406_v19  ;;  %v457_v32 = vsel %vm455_vm1, %v452_v28, 0  ;;  %v414_v33 = vadd.f32 %v412_v24, %v410_v23  ;;  %v442_v34 = vmul.f32 %v5053_v22, %v4254_v16  ;;  %v4248_v2 = vld [vmem:[%s5015_s9 + $0xc] sm:$0xf]  ;;  %v4250_v3 = vld [vmem:[%s5015_s9 + $0x24] sm:$0xf]  ;;  %s5384_s28 = scalar_lea.vmem [#allocation7], %s4241_s26 }
  0x54   : > { %v440_v35 = vsub.f32 %v432_v26, %v438_v27  ;;  %v5061_v36 = vand.u32 4294901760, %v457_v32  ;;  %v444_v37 = vmul.f32 %v5051_v21, %v4256_v20  ;;  %v910_v38 = vsel %vm455_vm1, %v4261_v30, 0  ;;  %v4255_v12 = vld [vmem:[%s5015_s9 + $0x14] sm:$0xf]  ;;  %v4257_v13 = vld [vmem:[%s5015_s9 + $0x2c] sm:$0xf] }
  0x55   : > { %v416_v39 = vadd.f32 %v408_v31, %v380_v25  ;;  %v418_v40 = vadd.f32 %v414_v33, %v386_v29  ;;  %v5068_v44 = vand.u32 4294901760, %v910_v38  ;;  %v373_v6 = vmul.f32 %v5033_v7, %v361_v0  ;;  %s4054_s5 = scalar_lea.sflag [#allocation4], %s5022_s25 }
  0x56   : > { %v5066_v41 = vsub.f32 %v457_v32, %v5061_v36  ;;  %v446_v42 = vadd.f32 %v444_v37, %v442_v34  ;;  %v379_v9 = vmul.f32 %v5035_v8, %v4243_v1  ;;  %v401_v10 = vmul.f32 %v5042_v14, %v4248_v2 }
  0x57   : > { %v448_v43 = vadd.f32 %v440_v35, %v416_v39  ;;  %v5082_v52 = vsub.f32 %v910_v38, %v5068_v44  ;;  %v407_v11 = vmul.f32 %v5044_v15, %v4250_v3  ;;  %v433_v16 = vmul.f32 %v5051_v21, %v4255_v12 }
  0x58   : > { %v5071_v45 = vand.u32 4294901760, %v5066_v41  ;;  %v450_v46 = vadd.f32 %v446_v42, %v418_v40  ;;  %v381_v17 = vsub.f32 %v373_v6, %v379_v9  ;;  %v439_v19 = vmul.f32 %v5053_v22, %v4257_v13 }
  0x59   : > { %v461_v47 = vsel %vm459_vm2, %v448_v43, 0  ;;  %v5102_v57 = vand.u32 4294901760, %v5082_v52  ;;  %v409_v18 = vsub.f32 %v401_v10, %v407_v11  ;;  %v383_v24 = vmul.f32 %v5035_v8, %v361_v0 }
  0x5a   : > { %v5074_v48 = vand.u32 4294901760, %v461_v47  ;;  %v532_v49 = vsub.f32 %v5066_v41, %v5071_v45  ;;  %v913_v50 = vsel %vm459_vm2, %v450_v46, 0  ;;  %v441_v23 = vsub.f32 %v433_v16, %v439_v19 }
  0x5b   : > { %v5079_v51 = vand.u32 4294901760, %v913_v50  ;;  %v984_v61 = vsub.f32 %v5082_v52, %v5102_v57  ;;  %v417_v20 = vadd.f32 %v409_v18, %v381_v17  ;;  %v385_v25 = vmul.f32 %v5033_v7, %v4243_v1 }
  0x5c   : > { %4367 = vmatpush3.msra.mxu0 %v5074_v48  ;;  %v5085_v53 = vand.u32 4294901760, %v532_v49  ;;  %v5088_v54 = vsub.f32 %v461_v47, %v5074_v48  ;;  %v411_v27 = vmul.f32 %v5044_v15, %v4248_v2  ;;  %v413_v28 = vmul.f32 %v5042_v14, %v4250_v3 }
  0x5d   : > { %4376 = vmatprep.subr.mxu0 %v4851_v4  ;;  %v5096_v56 = vsub.f32 %v913_v50, %v5079_v51  ;;  %v5129_v63 = vand.u32 4294901760, %v984_v61  ;;  %v449_v26 = vadd.f32 %v441_v23, %v417_v20  ;;  %v387_v7 = vadd.f32 %v385_v25, %v383_v24 }
  0x5e   : > { %4369 = vmatmul.mubr.f32.vlgmr.msra.gmra.mxu0 %v5085_v53  ;;  %v5093_v55 = vand.u32 4294901760, %v5088_v54  ;;  %v415_v14 = vadd.f32 %v413_v28, %v411_v27  ;;  %v443_v15 = vmul.f32 %v5053_v22, %v4255_v12  ;;  %v445_v29 = vmul.f32 %v5051_v21, %v4257_v13 }
  0x5f   : > { %4377 = vmatpush3.msra.mxu0 %v5088_v54  ;;  %4378 = vmatprep.mubr.msk.f32.mxu0 %vm4852_vm0, %v4851_v4  ;;  %v5111_v60 = vand.u32 4294901760, %v5096_v56  ;;  %v2259_v8 = vsel %vm459_vm2, %v449_v26, 0  ;;  %vm1362_vm3 = vcmask 125952  }
  0x60   : > { %v573_v58 = vsub.f32 %v5088_v54, %v5093_v55  ;;  %4386 = vmatprep.subr.mxu0 %v4851_v4  ;;  %v5210_v30 = vand.u32 4294901760, %v2259_v8  ;;  %v419_v21 = vadd.f32 %v415_v14, %v387_v7  ;;  %v447_v22 = vadd.f32 %v445_v29, %v443_v15 }
  0x61   : > { %v1025_v62 = vsub.f32 %v5096_v56, %v5111_v60 }
  0x62   : > { %v5107_v59 = vand.u32 4294901760, %v573_v58  ;;  %4379 = vmatmul.mubr.f32.vlgmr.msra.gmra.mxu0 %v5066_v41  ;;  %v5223_v31 = vsub.f32 %v2259_v8, %v5210_v30  ;;  %v451_v32 = vadd.f32 %v447_v22, %v419_v21 }
  0x63   : > { %4387 = vmatpush3.msra.mxu0 %v5093_v55  ;;  %4388 = vmatprep.mubr.msk.f32.mxu0 %vm4852_vm0, %v4851_v4  ;;  %v5143_v5 = vand.u32 4294901760, %v1025_v62 }
  0x64   : > { %4372 = vmatpush3.msra.mxu1 %v5107_v59  ;;  %4396 = vmatprep.subr.mxu0 %v4851_v4  ;;  %v5236_v33 = vand.u32 4294901760, %v5223_v31  ;;  %v2708_v34 = vsel %vm459_vm2, %v451_v32, 0 }
  0x65   : > { %4374 = vmatmul.mubr.f32.vlgmr.msra.gmra.mxu1 %v5061_v36  ;;  %4381 = vmatprep.subr.mxu1 %v4851_v4  ;;  %v5251_v37 = vand.u32 4294901760, %v2708_v34 }
  0x66   : > { %4382 = vmatpush3.msra.mxu1 %v5074_v48  ;;  %4383 = vmatprep.mubr.msk.f32.mxu1 %vm4852_vm0, %v4851_v4  ;;  %v2371_v35 = vsub.f32 %v5223_v31, %v5236_v33 }
  0x67   : > { %4391 = vmatprep.subr.mxu1 %v4851_v4  ;;  %4389 = vmatmul.mubr.f32.vlgmr.msra.gmra.mxu0 %v5061_v36  ;;  %v5264_v39 = vsub.f32 %v2708_v34, %v5251_v37 }
  0x68   : > { %4397 = vmatpush3.msra.mxu0 %v5079_v51  ;;  %4398 = vmatprep.mubr.msk.f32.mxu0 %vm4852_vm0, %v4851_v4  ;;  %v2372_v38 = vand.u32 4294901760, %v2371_v35 }
  0x69   : > { %4384 = vmatmul.mubr.f32.vlgmr.msra.gmra.mxu1 %v5071_v45  ;;  %4406 = vmatprep.subr.mxu0 %v4851_v4  ;;  %v5276_v40 = vand.u32 4294901760, %v5264_v39 }
  0x6a   : > { %4392 = vmatpush3.msra.mxu1 %v5074_v48  ;;  %4393 = vmatprep.mubr.msk.f32.mxu1 %vm4852_vm0, %v4851_v4 }
  0x6b   : > { %4401 = vmatprep.subr.mxu1 %v4851_v4  ;;  %4399 = vmatmul.mubr.f32.vlgmr.msra.gmra.mxu0 %v5129_v63  ;;  %v2820_v42 = vsub.f32 %v5264_v39, %v5276_v40 }
  0x6c   : > { %4407 = vmatpush3.msra.mxu0 %v5096_v56  ;;  %4408 = vmatprep.mubr.msk.f32.mxu0 %vm4852_vm0, %v4851_v4 }
  0x6d   : > { %4394 = vmatmul.mubr.f32.vlgmr.msra.gmra.mxu1 %v5061_v36  ;;  %4416 = vmatprep.subr.mxu0 %v4851_v4  ;;  %v2821_v43 = vand.u32 4294901760, %v2820_v42 }
  0x6e   : > { %4402 = vmatpush3.msra.mxu1 %v5143_v5  ;;  %4403 = vmatprep.mubr.msk.f32.mxu1 %vm4852_vm0, %v4851_v4 }
  0x6f   : > { %4411 = vmatprep.subr.mxu1 %v4851_v4  ;;  %4409 = vmatmul.mubr.f32.vlgmr.msra.gmra.mxu0 %v5082_v52 }
  0x70   : > { %4417 = vmatpush3.msra.mxu0 %v5111_v60  ;;  %4418 = vmatprep.mubr.msk.f32.mxu0 %vm4852_vm0, %v4851_v4 }
  0x71   : > { %4404 = vmatmul.mubr.f32.vlgmr.msra.gmra.mxu1 %v5068_v44  ;;  %4426 = vmatprep.subr.mxu0 %v4851_v4 }
  0x72   : > { %4412 = vmatpush3.msra.mxu1 %v5079_v51  ;;  %4413 = vmatprep.mubr.msk.f32.mxu1 %vm4852_vm0, %v4851_v4 }
  0x73   : > { %4421 = vmatprep.subr.mxu1 %v4851_v4  ;;  %4419 = vmatmul.mubr.f32.vlgmr.msra.gmra.mxu0 %v5068_v44 }
  0x74   : > { %4427 = vmatpush3.msra.mxu0 %v5074_v48  ;;  %4428 = vmatprep.mubr.msk.f32.mxu0 %vm4852_vm0, %v4851_v4 }
  0x75   : > { %4414 = vmatmul.mubr.f32.vlgmr.msra.gmra.mxu1 %v5102_v57  ;;  %4436 = vmatprep.subr.mxu0 %v4851_v4 }
  0x76   : > { %4422 = vmatpush3.msra.mxu1 %v5079_v51  ;;  %4423 = vmatprep.mubr.msk.f32.mxu1 %vm4852_vm0, %v4851_v4 }
  0x77   : > { %4431 = vmatprep.subr.mxu1 %v4851_v4  ;;  %4429 = vmatmul.mubr.f32.vlgmr.msra.gmra.mxu0 %v5129_v63 }
  0x78   : > { %4437 = vmatpush3.msra.mxu0 %v5088_v54  ;;  %4438 = vmatprep.mubr.msk.f32.mxu0 %vm4852_vm0, %v4851_v4 }
  0x79   : > { %4424 = vmatmul.mubr.f32.vlgmr.msra.gmra.mxu1 %v5068_v44  ;;  %4446 = vmatprep.subr.mxu0 %v4851_v4 }
  0x7a   : > { %4432 = vmatpush3.msra.mxu1 %v5107_v59  ;;  %4433 = vmatprep.mubr.msk.f32.mxu1 %vm4852_vm0, %v4851_v4 }
  0x7b   : > { %4441 = vmatprep.subr.mxu1 %v4851_v4  ;;  %4439 = vmatmul.mubr.f32.vlgmr.msra.gmra.mxu0 %v5082_v52 }
  0x7c   : > { %4447 = vmatpush3.msra.mxu0 %v5093_v55  ;;  %4448 = vmatprep.mubr.msk.f32.mxu0 %vm4852_vm0, %v4851_v4 }
  0x7d   : > { %4434 = vmatmul.mubr.f32.vlgmr.msra.gmra.mxu1 %v5068_v44  ;;  %4456 = vmatprep.subr.mxu0 %v4851_v4 }
  0x7e   : > { %4442 = vmatpush3.msra.mxu1 %v5074_v48  ;;  %4443 = vmatprep.mubr.msk.f32.mxu1 %vm4852_vm0, %v4851_v4 }
  0x7f   : > { %4451 = vmatprep.subr.mxu1 %v4851_v4  ;;  %4449 = vmatmul.mubr.f32.vlgmr.msra.gmra.mxu0 %v5068_v44 }
  0x80   : > { %4457 = vmatpush3.msra.mxu0 %v5079_v51  ;;  %4458 = vmatprep.mubr.msk.f32.mxu0 %vm4852_vm0, %v4851_v4 }
  0x81   : > { %4444 = vmatmul.mubr.f32.vlgmr.msra.gmra.mxu1 %v5102_v57  ;;  %4466 = vmatprep.subr.mxu0 %v4851_v4 }
  0x82   : > { %4452 = vmatpush3.msra.mxu1 %v5074_v48  ;;  %4453 = vmatprep.mubr.msk.f32.mxu1 %vm4852_vm0, %v4851_v4 }
  0x83   : > { %4461 = vmatprep.subr.mxu1 %v4851_v4  ;;  %4459 = vmatmul.mubr.f32.vlgmr.msra.gmra.mxu0 %v5085_v53 }
  0x84   : > { %4467 = vmatpush3.msra.mxu0 %v5096_v56  ;;  %4468 = vmatprep.mubr.msk.f32.mxu0 %vm4852_vm0, %v4851_v4 }
  0x85   : > { %4454 = vmatmul.mubr.f32.vlgmr.msra.gmra.mxu1 %v5068_v44  ;;  %4476 = vmatprep.subr.mxu0 %v4851_v4 }
  0x86   : > { %4462 = vmatpush3.msra.mxu1 %v5143_v5  ;;  %4463 = vmatprep.mubr.msk.f32.mxu1 %vm4852_vm0, %v4851_v4 }
  0x87   : > { %4471 = vmatprep.subr.mxu1 %v4851_v4  ;;  %4469 = vmatmul.mubr.f32.vlgmr.msra.gmra.mxu0 %v5066_v41 }
  0x88   : > { %4477 = vmatpush3.msra.mxu0 %v5111_v60  ;;  %4478 = vmatprep.mubr.msk.f32.mxu0 %vm4852_vm0, %v4851_v4 }
  0x89   : > { %4464 = vmatmul.mubr.f32.vlgmr.msra.gmra.mxu1 %v5061_v36  ;;  %4486 = vmatprep.subr.mxu0 %v4851_v4 }
  0x8a   : > { %4472 = vmatpush3.msra.mxu1 %v5079_v51  ;;  %4473 = vmatprep.mubr.msk.f32.mxu1 %vm4852_vm0, %v4851_v4 }
  0x8b   : > { %4481 = vmatprep.subr.mxu1 %v4851_v4  ;;  %4479 = vmatmul.mubr.f32.vlgmr.msra.gmra.mxu0 %v5061_v36 }
  0x8c   : > { %4487 = vmatpush3.msra.mxu0 %v5210_v30  ;;  %4488 = vmatprep.mubr.msk.f32.mxu0 %vm4852_vm0, %v4851_v4 }
  0x8d   : > { %4474 = vmatmul.mubr.f32.vlgmr.msra.gmra.mxu1 %v5071_v45  ;;  %4496 = vmatprep.subr.mxu0 %v4851_v4 }
  0x8e   : > { %4482 = vmatpush3.msra.mxu1 %v5079_v51  ;;  %4483 = vmatprep.mubr.msk.f32.mxu1 %vm4852_vm0, %v4851_v4 }
  0x8f   : > { %4491 = vmatprep.subr.mxu1 %v4851_v4  ;;  %4489 = vmatmul.mubr.f32.vlgmr.msra.gmra.mxu0 %v5085_v53 }
  0x90   : > { %4497 = vmatpush3.msra.mxu0 %v5223_v31  ;;  %4498 = vmatprep.mubr.msk.f32.mxu0 %vm4852_vm0, %v4851_v4 }
  0x91   : > { %4484 = vmatmul.mubr.f32.vlgmr.msra.gmra.mxu1 %v5061_v36  ;;  %4506 = vmatprep.subr.mxu0 %v4851_v4 }
  0x92   : > { %4492 = vmatpush3.msra.mxu1 %v2372_v38  ;;  %4493 = vmatprep.mubr.msk.f32.mxu1 %vm4852_vm0, %v4851_v4 }
  0x93   : > { %4501 = vmatprep.subr.mxu1 %v4851_v4  ;;  %4499 = vmatmul.mubr.f32.vlgmr.msra.gmra.mxu0 %v5066_v41 }
  0x94   : > { %4507 = vmatpush3.msra.mxu0 %v5236_v33  ;;  %4508 = vmatprep.mubr.msk.f32.mxu0 %vm4852_vm0, %v4851_v4 }
  0x95   : > { %4494 = vmatmul.mubr.f32.vlgmr.msra.gmra.mxu1 %v5061_v36  ;;  %4516 = vmatprep.subr.mxu0 %v4851_v4 }
  0x96   : > { %4502 = vmatpush3.msra.mxu1 %v5210_v30  ;;  %4503 = vmatprep.mubr.msk.f32.mxu1 %vm4852_vm0, %v4851_v4 }
  0x97   : > { %4511 = vmatprep.subr.mxu1 %v4851_v4  ;;  %4509 = vmatmul.mubr.f32.vlgmr.msra.gmra.mxu0 %v5061_v36 }
  0x98   : > { %4517 = vmatpush3.msra.mxu0 %v5251_v37  ;;  %4518 = vmatprep.mubr.msk.f32.mxu0 %vm4852_vm0, %v4851_v4 }
  0x99   : > { %4504 = vmatmul.mubr.f32.vlgmr.msra.gmra.mxu1 %v5071_v45  ;;  %4526 = vmatprep.subr.mxu0 %v4851_v4 }
  0x9a   : > { %4512 = vmatpush3.msra.mxu1 %v5210_v30  ;;  %4513 = vmatprep.mubr.msk.f32.mxu1 %vm4852_vm0, %v4851_v4 }
  0x9b   : > { %4521 = vmatprep.subr.mxu1 %v4851_v4  ;;  %4519 = vmatmul.mubr.f32.vlgmr.msra.gmra.mxu0 %v5129_v63 }
  0x9c   : > { %4527 = vmatpush3.msra.mxu0 %v5264_v39  ;;  %4528 = vmatprep.mubr.msk.f32.mxu0 %vm4852_vm0, %v4851_v4 }
  0x9d   : > { %4514 = vmatmul.mubr.f32.vlgmr.msra.gmra.mxu1 %v5061_v36  ;;  %4536 = vmatprep.subr.mxu0 %v4851_v4 }
  0x9e   : > { %4522 = vmatpush3.msra.mxu1 %v2821_v43  ;;  %4523 = vmatprep.mubr.msk.f32.mxu1 %vm4852_vm0, %v4851_v4 }
  0x9f   : > { %4531 = vmatprep.subr.mxu1 %v4851_v4  ;;  %4529 = vmatmul.mubr.f32.vlgmr.msra.gmra.mxu0 %v5082_v52 }
  0xa0   : > { %4537 = vmatpush3.msra.mxu0 %v5276_v40  ;;  %4538 = vmatprep.mubr.msk.f32.mxu0 %vm4852_vm0, %v4851_v4 }
  0xa1   : > { %4524 = vmatmul.mubr.f32.vlgmr.msra.gmra.mxu1 %v5068_v44  ;;  %4546 = vmatprep.subr.mxu0 %v4851_v4 }
  0xa2   : > { %4532 = vmatpush3.msra.mxu1 %v5251_v37  ;;  %4533 = vmatprep.mubr.msk.f32.mxu1 %vm4852_vm0, %v4851_v4 }
  0xa3   : > { %4541 = vmatprep.subr.mxu1 %v4851_v4  ;;  %4539 = vmatmul.mubr.f32.vlgmr.msra.gmra.mxu0 %v5068_v44 }
  0xa4   : > { %4547 = vmatpush3.msra.mxu0 %v5210_v30  ;;  %4548 = vmatprep.mubr.msk.f32.mxu0 %vm4852_vm0, %v4851_v4 }
  0xa5   : > { %4534 = vmatmul.mubr.f32.vlgmr.msra.gmra.mxu1 %v5102_v57  ;;  %4556 = vmatprep.subr.mxu0 %v4851_v4 }
  0xa6   : > { %4542 = vmatpush3.msra.mxu1 %v5251_v37  ;;  %4543 = vmatprep.mubr.msk.f32.mxu1 %vm4852_vm0, %v4851_v4 }
  0xa7   : > { %4551 = vmatprep.subr.mxu1 %v4851_v4  ;;  %4549 = vmatmul.mubr.f32.vlgmr.msra.gmra.mxu0 %v5129_v63 }
  0xa8   : > { %4557 = vmatpush3.msra.mxu0 %v5223_v31  ;;  %4558 = vmatprep.mubr.msk.f32.mxu0 %vm4852_vm0, %v4851_v4 }
  0xa9   : > { %4544 = vmatmul.mubr.f32.vlgmr.msra.gmra.mxu1 %v5068_v44  ;;  %4566 = vmatprep.subr.mxu0 %v4851_v4 }
  0xaa   : > { %4552 = vmatpush3.msra.mxu1 %v2372_v38  ;;  %4553 = vmatprep.mubr.msk.f32.mxu1 %vm4852_vm0, %v4851_v4 }
  0xab   : > { %4561 = vmatprep.subr.mxu1 %v4851_v4  ;;  %4559 = vmatmul.mubr.f32.vlgmr.msra.gmra.mxu0 %v5082_v52 }
  0xac   : > { %4567 = vmatpush3.msra.mxu0 %v5236_v33  ;;  %4568 = vmatprep.mubr.msk.f32.mxu0 %vm4852_vm0, %v4851_v4 }
  0xad   : > { %4554 = vmatmul.mubr.f32.vlgmr.msra.gmra.mxu1 %v5068_v44  ;;  %4576 = vmatprep.subr.mxu0 %v4851_v4 }
  0xae   : > { %4562 = vmatpush3.msra.mxu1 %v5210_v30  ;;  %4563 = vmatprep.mubr.msk.f32.mxu1 %vm4852_vm0, %v4851_v4 }
  0xaf   : > { %4571 = vmatprep.subr.mxu1 %v4851_v4  ;;  %4569 = vmatmul.mubr.f32.vlgmr.msra.gmra.mxu0 %v5068_v44 }
  0xb0   : > { %4577 = vmatpush3.msra.mxu0 %v5251_v37  ;;  %4578 = vmatprep.mubr.msk.f32.mxu0 %vm4852_vm0, %v4851_v4 }
  0xb1   : > { %4564 = vmatmul.mubr.f32.vlgmr.msra.gmra.mxu1 %v5102_v57  ;;  %4586 = vmatprep.subr.mxu0 %v4851_v4 }
  0xb2   : > { %4572 = vmatpush3.msra.mxu1 %v5210_v30  ;;  %4573 = vmatprep.mubr.msk.f32.mxu1 %vm4852_vm0, %v4851_v4 }
  0xb3   : > { %4581 = vmatprep.subr.mxu1 %v4851_v4  ;;  %4579 = vmatmul.mubr.f32.vlgmr.msra.gmra.mxu0 %v5085_v53 }
  0xb4   : > { %4587 = vmatpush3.msra.mxu0 %v5264_v39  ;;  %4588 = vmatprep.mubr.msk.f32.mxu0 %vm4852_vm0, %v4851_v4 }
  0xb5   : > { %4574 = vmatmul.mubr.f32.vlgmr.msra.gmra.mxu1 %v5068_v44  ;;  %4596 = vmatprep.subr.mxu0 %v4851_v4 }
  0xb6   : > { %4582 = vmatpush3.msra.mxu1 %v2821_v43  ;;  %4583 = vmatprep.mubr.msk.f32.mxu1 %vm4852_vm0, %v4851_v4 }
  0xb7   : > { %4591 = vmatprep.subr.mxu1 %v4851_v4  ;;  %4589 = vmatmul.mubr.f32.vlgmr.msra.gmra.mxu0 %v5066_v41 }
  0xb8   : > { %4597 = vmatpush3.msra.mxu0 %v5276_v40  ;;  %4598 = vmatprep.mubr.msk.f32.mxu0 %vm4852_vm0, %v4851_v4 }
  0xb9   : > { %4584 = vmatmul.mubr.f32.vlgmr.msra.gmra.mxu1 %v5061_v36 }
  0xba   : > { %4592 = vmatpush3.msra.mxu1 %v5251_v37  ;;  %4593 = vmatprep.mubr.msk.f32.mxu1 %vm4852_vm0, %v4851_v4 }
  0xbb   : > { %4601 = vmatprep.subr.mxu1 %v4851_v4  ;;  %4599 = vmatmul.mubr.f32.vlgmr.msra.gmra.mxu0 %v5061_v36 }
  0xbd   : > { %4594 = vmatmul.mubr.f32.vlgmr.msra.gmra.mxu1 %v5071_v45 }
  0xbe   : > { %4602 = vmatpush3.msra.mxu1 %v5251_v37  ;;  %4603 = vmatprep.mubr.msk.f32.mxu1 %vm4852_vm0, %v4851_v4 }
  0xc1   : > { %4604 = vmatmul.mubr.f32.vlgmr.msra.gmra.mxu1 %v5061_v36 }
 0x11e   : > { %v535_v41 = vpop.f32.mrf.mxu0 }
 0x120   : > { %v4370_v44 = vpop.f32.mrf.mxu0 }
 0x122   : > { %v685_v46 = vpop.f32.mrf.mxu0 }
 0x124   : > { %v4380_v47 = vpop.f32.mrf.mxu0 }
 0x125   : > { %v611_v48 = vpop.f32.mrf.mxu1 }
 0x126   : > { %v612_v53 = vadd.f32 %v611_v48, %v535_v41 }
 0x127   : > { %v4375_v49 = vpop.f32.mrf.mxu1  ;;  %v833_v50 = vpop.f32.mrf.mxu0 }
 0x128   : > { %v686_v57 = vadd.f32 %v685_v46, %v612_v53 }
 0x129   : > { %v759_v51 = vpop.f32.mrf.mxu1  ;;  %v4390_v52 = vpop.f32.mrf.mxu0 }
 0x12a   : > { %v760_v60 = vadd.f32 %v759_v51, %v686_v57 }
 0x12b   : > { %v4385_v54 = vpop.f32.mrf.mxu1  ;;  %v987_v55 = vpop.f32.mrf.mxu0 }
 0x12c   : > { %v834_v3 = vadd.f32 %v833_v50, %v760_v60 }
 0x12d   : > { %v905_v45 = vpop.f32.mrf.mxu1  ;;  %v4400_v56 = vpop.f32.mrf.mxu0 }
 0x12e   : > { %v906_v13 = vadd.f32 %v905_v45, %v834_v3 }
 0x12f   : > { %v4395_v58 = vpop.f32.mrf.mxu1  ;;  %v1137_v4 = vpop.f32.mrf.mxu0 }
 0x131   : > { %v1063_v59 = vpop.f32.mrf.mxu1  ;;  %v4410_v36 = vpop.f32.mrf.mxu0 }
 0x132   : > { %v1064_v61 = vadd.f32 %v1063_v59, %v987_v55 }
 0x133   : > { %v4405_v62 = vpop.f32.mrf.mxu1  ;;  %v1285_v63 = vpop.f32.mrf.mxu0 }
 0x134   : > { %v1138_v0 = vadd.f32 %v1137_v4, %v1064_v61 }
 0x135   : > { %v1211_v1 = vpop.f32.mrf.mxu1  ;;  %v4420_v2 = vpop.f32.mrf.mxu0 }
 0x136   : > { %v1212_v5 = vadd.f32 %v1211_v1, %v1138_v0 }
 0x137   : > { %v4415_v6 = vpop.f32.mrf.mxu1  ;;  %v1436_v9 = vpop.f32.mrf.mxu0 }
 0x138   : > { %v1286_v10 = vadd.f32 %v1285_v63, %v1212_v5 }
 0x139   : > { %v1357_v11 = vpop.f32.mrf.mxu1  ;;  %v4430_v12 = vpop.f32.mrf.mxu0 }
 0x13a   : > { %v1358_v16 = vadd.f32 %v1357_v11, %v1286_v10 }
 0x13b   : > { %v4425_v17 = vpop.f32.mrf.mxu1  ;;  %v1586_v18 = vpop.f32.mrf.mxu0 }
 0x13c   : > { %v1361_v19 = vsub.f32 %v906_v13, %v1358_v16 }
 0x13d   : > { %v1512_v20 = vpop.f32.mrf.mxu1  ;;  %v4440_v23 = vpop.f32.mrf.mxu0 }
 0x13e   : > { %1363 = vst.msk [vmem:[%s5384_s28] sm:$0xf] %vm1362_vm3, %v1361_v19  ;;  %v1513_v24 = vadd.f32 %v1512_v20, %v1436_v9 }
 0x13f   : > { %v4435_v25 = vpop.f32.mrf.mxu1  ;;  %v1734_v26 = vpop.f32.mrf.mxu0 }
 0x140   : > { %v1587_v27 = vadd.f32 %v1586_v18, %v1513_v24 }
 0x141   : > { %v1660_v28 = vpop.f32.mrf.mxu1  ;;  %v4450_v7 = vpop.f32.mrf.mxu0 }
 0x142   : > { %v1661_v8 = vadd.f32 %v1660_v28, %v1587_v27 }
 0x143   : > { %v4445_v14 = vpop.f32.mrf.mxu1  ;;  %v1882_v15 = vpop.f32.mrf.mxu0 }
 0x144   : > { %v1735_v29 = vadd.f32 %v1734_v26, %v1661_v8 }
 0x145   : > { %v1806_v30 = vpop.f32.mrf.mxu1  ;;  %v4460_v21 = vpop.f32.mrf.mxu0 }
 0x146   : > { %v1807_v22 = vadd.f32 %v1806_v30, %v1735_v29 }
 0x147   : > { %v4455_v31 = vpop.f32.mrf.mxu1  ;;  %v2032_v32 = vpop.f32.mrf.mxu0 }
 0x148   : > { %v1883_v33 = vadd.f32 %v1882_v15, %v1807_v22 }
 0x149   : > { %v1958_v34 = vpop.f32.mrf.mxu1  ;;  %v4470_v35 = vpop.f32.mrf.mxu0 }
 0x14a   : > { %v1959_v37 = vadd.f32 %v1958_v34, %v1883_v33 }
 0x14b   : > { %v4465_v38 = vpop.f32.mrf.mxu1  ;;  %v2180_v39 = vpop.f32.mrf.mxu0 }
 0x14c   : > { %v2033_v40 = vadd.f32 %v2032_v32, %v1959_v37 }
 0x14d   : > { %v2106_v42 = vpop.f32.mrf.mxu1  ;;  %v4480_v43 = vpop.f32.mrf.mxu0 }
 0x14e   : > { %v2107_v41 = vadd.f32 %v2106_v42, %v2033_v40 }
 0x14f   : > { %v4475_v44 = vpop.f32.mrf.mxu1  ;;  %v2333_v46 = vpop.f32.mrf.mxu0 }
 0x150   : > { %v2181_v47 = vadd.f32 %v2180_v39, %v2107_v41 }
 0x151   : > { %v2252_v48 = vpop.f32.mrf.mxu1  ;;  %v4490_v49 = vpop.f32.mrf.mxu0 }
 0x152   : > { %v2253_v50 = vadd.f32 %v2252_v48, %v2181_v47 }
 0x153   : > { %v4485_v51 = vpop.f32.mrf.mxu1  ;;  %v2483_v52 = vpop.f32.mrf.mxu0 }
 0x154   : > { %4262 = vst.msk [vmem:[%s5384_s28 + $0x8] sm:$0xf] %vm1362_vm3, %v2253_v50 }
 0x155   : > { %v2409_v53 = vpop.f32.mrf.mxu1  ;;  %v4500_v54 = vpop.f32.mrf.mxu0 }
 0x156   : > { %v2410_v58 = vadd.f32 %v2409_v53, %v2333_v46 }
 0x157   : > { %v4495_v55 = vpop.f32.mrf.mxu1  ;;  %v2631_v45 = vpop.f32.mrf.mxu0 }
 0x158   : > { %v2484_v61 = vadd.f32 %v2483_v52, %v2410_v58 }
 0x159   : > { %v2557_v56 = vpop.f32.mrf.mxu1  ;;  %v4510_v57 = vpop.f32.mrf.mxu0 }
 0x15a   : > { %v2558_v2 = vadd.f32 %v2557_v56, %v2484_v61 }
 0x15b   : > { %v4505_v4 = vpop.f32.mrf.mxu1  ;;  %v2782_v59 = vpop.f32.mrf.mxu0 }
 0x15c   : > { %v2632_v12 = vadd.f32 %v2631_v45, %v2558_v2 }
 0x15d   : > { %v2703_v36 = vpop.f32.mrf.mxu1  ;;  %v4520_v60 = vpop.f32.mrf.mxu0 }
 0x15e   : > { %v2704_v23 = vadd.f32 %v2703_v36, %v2632_v12 }
 0x15f   : > { %v4515_v62 = vpop.f32.mrf.mxu1  ;;  %v2932_v63 = vpop.f32.mrf.mxu0 }
 0x161   : > { %v2858_v0 = vpop.f32.mrf.mxu1  ;;  %v4530_v1 = vpop.f32.mrf.mxu0 }
 0x162   : > { %v2859_v3 = vadd.f32 %v2858_v0, %v2782_v59 }
 0x163   : > { %v4525_v5 = vpop.f32.mrf.mxu1  ;;  %v3080_v6 = vpop.f32.mrf.mxu0 }
 0x164   : > { %v2933_v9 = vadd.f32 %v2932_v63, %v2859_v3 }
 0x165   : > { %v3006_v10 = vpop.f32.mrf.mxu1  ;;  %v4540_v11 = vpop.f32.mrf.mxu0 }
 0x166   : > { %v3007_v13 = vadd.f32 %v3006_v10, %v2933_v9 }
 0x167   : > { %v4535_v16 = vpop.f32.mrf.mxu1  ;;  %v3231_v17 = vpop.f32.mrf.mxu0 }
 0x168   : > { %v3081_v18 = vadd.f32 %v3080_v6, %v3007_v13 }
 0x169   : > { %v3152_v19 = vpop.f32.mrf.mxu1  ;;  %v4550_v20 = vpop.f32.mrf.mxu0 }
 0x16a   : > { %v3153_v24 = vadd.f32 %v3152_v19, %v3081_v18 }
 0x16b   : > { %v4545_v25 = vpop.f32.mrf.mxu1  ;;  %v3381_v26 = vpop.f32.mrf.mxu0 }
 0x16c   : > { %v3156_v27 = vsub.f32 %v2704_v23, %v3153_v24 }
 0x16d   : > { %v3307_v28 = vpop.f32.mrf.mxu1  ;;  %v4560_v7 = vpop.f32.mrf.mxu0 }
 0x16e   : > { %4263 = vst.msk [vmem:[%s5384_s28 + $0x4] sm:$0xf] %vm1362_vm3, %v3156_v27  ;;  %v3308_v8 = vadd.f32 %v3307_v28, %v3231_v17 }
 0x16f   : > { %v4555_v14 = vpop.f32.mrf.mxu1  ;;  %v3529_v15 = vpop.f32.mrf.mxu0 }
 0x170   : > { %v3382_v29 = vadd.f32 %v3381_v26, %v3308_v8 }
 0x171   : > { %v3455_v30 = vpop.f32.mrf.mxu1  ;;  %v4570_v21 = vpop.f32.mrf.mxu0 }
 0x172   : > { %v3456_v22 = vadd.f32 %v3455_v30, %v3382_v29 }
 0x173   : > { %v4565_v31 = vpop.f32.mrf.mxu1  ;;  %v3677_v32 = vpop.f32.mrf.mxu0 }
 0x174   : > { %v3530_v33 = vadd.f32 %v3529_v15, %v3456_v22 }
 0x175   : > { %v3601_v34 = vpop.f32.mrf.mxu1  ;;  %v4580_v35 = vpop.f32.mrf.mxu0 }
 0x176   : > { %v3602_v37 = vadd.f32 %v3601_v34, %v3530_v33 }
 0x177   : > { %v4575_v38 = vpop.f32.mrf.mxu1  ;;  %v3827_v39 = vpop.f32.mrf.mxu0 }
 0x178   : > { %v3678_v40 = vadd.f32 %v3677_v32, %v3602_v37 }
 0x179   : > { %v3753_v42 = vpop.f32.mrf.mxu1  ;;  %v4590_v43 = vpop.f32.mrf.mxu0 }
 0x17a   : > { %v3754_v41 = vadd.f32 %v3753_v42, %v3678_v40 }
 0x17b   : > { %v4585_v44 = vpop.f32.mrf.mxu1  ;;  %v3975_v46 = vpop.f32.mrf.mxu0 }
 0x17c   : > { %v3828_v47 = vadd.f32 %v3827_v39, %v3754_v41 }
 0x17d   : > { %v3901_v48 = vpop.f32.mrf.mxu1  ;;  %v4600_v49 = vpop.f32.mrf.mxu0 }
 0x17e   : > { %v3902_v50 = vadd.f32 %v3901_v48, %v3828_v47 }
 0x17f   : > { %v4595_v51 = vpop.f32.mrf.mxu1 }
 0x180   : > { %v3976_v52 = vadd.f32 %v3975_v46, %v3902_v50 }
 0x181   : > { %v4047_v53 = vpop.f32.mrf.mxu1 }
 0x182   : > { %v4048_v54 = vadd.f32 %v4047_v53, %v3976_v52 }
 0x183   : > { %v4605_v55 = vpop.f32.mrf.mxu1 }
 0x184   : > { %4264 = vst.msk [vmem:[%s5384_s28 + $0xc] sm:$0xf] %vm1362_vm3, %v4048_v54 }
 0x185   : > { %s4266_s24 = sshll.u32 %s4830_s18, 1  ;;  %s4611_s29 = smul.u32 12, %s4834_s19 }
 0x186   : > { %s4081_s23 = sshll.u32 %s5384_s28, 4  ;;  %s4853_s27 = smov 128   ;;  %s4082_s23 = int_to_ptr.vmem [resolvable:$true] %s4081_s23 }
 0x187   : > { %s4068_s15 = sadd.s32 %s4611_s29, %s4266_s24  ;;  %4614 = sst [smem:[#allocation9]] (%p4976_p13), %s4853_s27 }
 0x188   : > { %s4267_s8 = sshll.u32 %s4068_s15, 6  ;;  %s4854_s9 = smov 384  }
 0x189   : > { %s4070_s30 = scalar_lea.hbm %s5455_s3, %s4267_s8  ;;  %4615 = sst [smem:[#allocation9 + $0x1]] (%p4976_p13), %s4854_s9 }
 0x18a   : > { %s4855_s25 = smov 2   ;;  %s4856_s18 = smov 64  }
 0x18b   : > { %4616 = sst [smem:[#allocation9 + $0x2]] (%p4976_p13), %s4855_s25  ;;  %s4857_s19 = smov 4  }
 0x18c   : > { %4617 = sst [smem:[#allocation9 + $0x3]] (%p4976_p13), %s4856_s18  ;;  %s4858_s11 = smov 131072  }
 0x18d   : > { %4618 = sst [smem:[#allocation9 + $0x4]] (%p4976_p13), %s4856_s18  ;;  %s4859_s4 = smov 0  }
 0x18e   : > { %4619 = sst [smem:[#allocation9 + $0x5]] (%p4976_p13), %s4857_s19 }
 0x18f   : > { %4620 = dma.general (%p4976_p13), %s4082_s23, 256, %s4070_s30, %s4054_s5, %s4858_s11, [#allocation9], %s4859_s4, 0  }
 0x190 PF: > { %p4626_p7 = scmp.ge.s32.totalorder %s4846_s22, 2  ;;  %s4109_s26 = sand.u32 1, %s4806_s12  }
 0x191   : > { %s4110_s28 = scalar_lea.sflag [#allocation4], %s4109_s26 }
 0x192   : > { %p4623_p5 = pnand %p4626_p7, %p4982_p4 }
 0x194   : > { %p4624_p2 = pneg %p4623_p5 }
 0x196   : > { %4801 = dma.done.wait (%p4624_p2), %s4110_s28, 256  }
 0x197   : > { %4803 = vsyncadd (%p4624_p2), %s4110_s28, 4294967040  ;;  %s19_s22 = sadd.s32 1, %s4846_s22   ;;  %s5472_s24 = sld [smem:[#allocation15_spill]] }
 0x198   : > { %p16_p6 = scmp.ge.s32.totalorder %s19_s22, 8   ;;  %s5473_s10 = sld [smem:[#allocation14_spill]] }
 0x199   : > { %s5474_s5 = sld [smem:[#allocation12_spill]]  ;;  %s5476_s12 = smov %s4810_s13 }
 0x19a   : > { %s5475_s29 = sld [smem:[#allocation13_spill]]  ;;  %s5477_s13 = smov %s4814_s14 }
 0x19b   : > { %s5479_s15 = smov %s4822_s16  ;;  %s5480_s16 = smov %s4826_s17 }
 0x19c   : > { %s5482_s18 = smov %s4838_s20  ;;  %s5483_s19 = smov %s4842_s21 }
 0x19d   : > { %s5478_s14 = smov %s5472_s24  ;;  %18 = sbr.rel (!%p16_p6) target bundleno = 11 (0xb), region = 190 }
 0x19e   : > { %s5481_s17 = smov %s5473_s10 }
 0x19f   : > { %s5484_s20 = smov %s5474_s5 }
 0x1a0   : > { %s5485_s21 = smov %s5475_s29 }
 0x1a2   :  { %4115 = vsyncpa [#allocation3], 1 }
 0x1a3   :  { %4117 = vsyncpa [#allocation3 + $0x1], 1 }
 0x1a4   :  { %4118 = vsyncpa [#allocation4], 1 }
 0x1a5   :  { %4120 = vsyncpa [#allocation4 + $0x1], 1 }

</bundles_post_ra>
